<compile_context>
chip_gen: v6e
topology: v6e:2x2x1
jax: 0.10.0
libtpu: 0.0.40
codegen_flags: <defaults>
</compile_context>

<pallas_src>
import functools

import jax
import jax.numpy as jnp
from jax import lax
from jax.experimental import pallas as pl
from jax.experimental.pallas import tpu as pltpu

EPS = 1e-5          # BatchNorm1d eps
NEG_SLOPE = 0.2     # GATConv LeakyReLU negative slope
NEG_INF = -1e30
LANE = 128
SUBLANE = 8


def _round_up(x, m):
    return -(-x // m) * m


def _pad2(a, rows, cols):
    r, c = a.shape
    return jnp.pad(a, ((0, rows - r), (0, cols - c)))


# ---------------------------------------------------------------------------
# Fused kernel: grid = (num_layers,). Each step runs one GAT layer
# (projection + attention + aggregation) fused with ReLU + BatchNorm1d (eval).
# The last step additionally runs readout + post-MLP + log_softmax.
# ---------------------------------------------------------------------------
def _gnn_stack_kernel(x0_ref, adj_ref, w_ref, asrc_ref, adst_ref, bias_ref,
                      gamma_ref, beta_ref, rmean_ref, rvar_ref,
                      membt_ref, firstt_ref, invcnt_ref,
                      w1_ref, b1_ref, w2_ref, b2_ref,
                      out_ref, h_ref):
    l = pl.program_id(0)
    num_layers = pl.num_programs(0)

    # Layer 0: load the (padded) input features into the VMEM carry.
    @pl.when(l == 0)
    def _():
        h_ref[...] = x0_ref[...]

    x = h_ref[...]                                    # [N, F] f32 (carried)
    w = w_ref[0]                                      # [F, F]

    # ---- GATConv ----------------------------------------------------------
    # Projection on the MXU (bf16 inputs, f32 accumulate).
    h = jnp.dot(x.astype(jnp.bfloat16), w.astype(jnp.bfloat16),
                preferred_element_type=jnp.float32)   # [N, F]
    h_bf = h.astype(jnp.bfloat16)

    # Attention logits e[i, j] = a_dst . h_i + a_src . h_j  (dst i, src j).
    # col: VPU multiply + XLU lane-reduce (no width-1 MXU output);
    # row: feature-contraction dot so the result lands lane-major as [1, N].
    col = jnp.sum(h * adst_ref[0], axis=-1, keepdims=True)            # [N, 1]
    row = lax.dot_general(asrc_ref[0].astype(jnp.bfloat16), h_bf,
                          (((1,), (1,)), ((), ())),
                          preferred_element_type=jnp.float32)         # [1, N]
    e = col + row
    e = jnp.where(e > 0, e, NEG_SLOPE * e)            # LeakyReLU(0.2)
    mask = adj_ref[...].astype(jnp.float32) > 0.0     # bf16 {0,1} mask
    e = jnp.where(mask, e, NEG_INF)

    # Softmax over source nodes j (EUP reciprocal).
    m = jnp.max(e, axis=-1, keepdims=True)
    p = jnp.exp(e - m)
    s = jnp.sum(p, axis=-1, keepdims=True)
    attn = p * pl.reciprocal(s, approx=True)

    # Aggregate neighbours on the MXU, add GATConv bias.
    out = jnp.dot(attn.astype(jnp.bfloat16), h_bf,
                  preferred_element_type=jnp.float32) + bias_ref[0]

    # ---- ReLU + BatchNorm1d (eval) + Dropout (identity in eval) ------------
    out = jnp.maximum(out, 0.0)
    inv = lax.rsqrt(rvar_ref[0] + EPS)
    out = (out - rmean_ref[0]) * inv * gamma_ref[0] + beta_ref[0]
    h_ref[...] = out

    # ---- Fused readout + post-MLP + log_softmax on the last layer ----------
    @pl.when(l == num_layers - 1)
    def _():
        xf = h_ref[...]                               # [N, F]
        memb_t = membt_ref[...]                       # [B, N] one-hot membership
        B = memb_t.shape[0]

        # global_max_pool: per-graph masked max over the node axis.
        xb = jnp.broadcast_to(xf[None, :, :], (B, xf.shape[0], xf.shape[1]))
        mb = jnp.broadcast_to(memb_t[:, :, None] > 0.0, xb.shape)
        x1 = jnp.max(jnp.where(mb, xb, NEG_INF), axis=1)               # [B, F]

        # global_mean_pool: (memb @ x) / counts  (node-axis contraction, MXU)
        x2 = lax.dot_general(memb_t, xf, (((1,), (0,)), ((), ())),
                             preferred_element_type=jnp.float32) * invcnt_ref[...]
        # first node of every graph: one-hot gather via matmul
        x3 = lax.dot_general(firstt_ref[...], xf, (((1,), (0,)), ((), ())),
                             preferred_element_type=jnp.float32)       # [B, F]

        xc = jnp.concatenate([x1, x2, x3], axis=1)    # [B, 3F] (128-aligned)

        # post_mp: Linear -> Dropout(identity, eval) -> Linear
        h1 = jnp.dot(xc, w1_ref[...], preferred_element_type=jnp.float32) + b1_ref[...]
        h2 = jnp.dot(h1, w2_ref[...], preferred_element_type=jnp.float32) + b2_ref[...]

        # log_softmax over the real classes (axis=1)
        mm = jnp.max(h2, axis=1, keepdims=True)
        z = h2 - mm
        lse = jnp.log(jnp.sum(jnp.exp(z), axis=1, keepdims=True))
        out_ref[...] = z - lse


# ---------------------------------------------------------------------------
# Host wrapper: pad / stack params, build adjacency + graph bookkeeping, call
# the single fused pallas kernel. Fully jittable (num_graphs static).
# ---------------------------------------------------------------------------
def gnn_stack_forward(x, edge_index, batch, layer_params, mlp_params, *, num_graphs):
    n, in_dim = x.shape
    hidden = layer_params[-1][0].shape[1]
    num_layers = len(layer_params)
    fpad = _round_up(max(in_dim, hidden, LANE), LANE)      # lane-dense features
    npad = _round_up(n, SUBLANE)
    w1, b1, w2, b2 = mlp_params
    mlp_in = w1.shape[0]                                   # 3 * hidden
    mlp_pad = _round_up(max(w1.shape[1], LANE), LANE)
    out_dim = w2.shape[1]

    # Node features padded to [npad, fpad] (zeros in padded rows/cols).
    x0 = _pad2(x.astype(jnp.float32), npad, fpad)

    # Dense adjacency adj[dst, src] = 1 for every edge src->dst plus self loops
    # (GATConv default add_self_loops=True). Stored as a bf16 mask.
    src, dst = edge_index[0], edge_index[1]
    adj = jnp.zeros((npad, npad), jnp.float32).at[dst, src].set(1.0)
    adj = jnp.maximum(adj, jnp.eye(npad, dtype=jnp.float32)).astype(jnp.bfloat16)

    # Graph bookkeeping, vectorized (no host sync, no per-graph dispatches).
    gids = jnp.arange(num_graphs, dtype=batch.dtype)
    memb = (batch[None, :] == gids[:, None]).astype(jnp.float32)       # [B, n]
    inv_cnt = 1.0 / jnp.sum(memb, axis=1, keepdims=True)               # [B, 1]
    first_idx = jnp.argmax(memb, axis=1)                               # [B]
    first = (jnp.arange(n)[None, :] == first_idx[:, None]).astype(jnp.float32)
    memb_t = _pad2(memb, num_graphs, npad)
    first_t = _pad2(first, num_graphs, npad)

    # Stack + zero-pad per-layer parameters; padded BN columns use
    # (mean=0, var=1, gamma=0, beta=0) so padded features stay exactly 0.
    w_s    = jnp.stack([_pad2(p[0], fpad, fpad) for p in layer_params])  # [L,F,F]
    asrc_s = jnp.stack([_pad2(p[1], 1, fpad) for p in layer_params])     # [L,1,F]
    adst_s = jnp.stack([_pad2(p[2], 1, fpad) for p in layer_params])
    bias_s = jnp.stack([_pad2(p[3], 1, fpad) for p in layer_params])
    gam_s  = jnp.stack([_pad2(p[4], 1, fpad) for p in layer_params])
    bet_s  = jnp.stack([_pad2(p[5], 1, fpad) for p in layer_params])
    rme_s  = jnp.stack([_pad2(p[6], 1, fpad) for p in layer_params])
    rva_s  = jnp.stack([_pad2(p[7] - 1.0, 1, fpad) + 1.0 for p in layer_params])

    # Pad post-MLP weights so the [max|mean|first] concat is 128-lane aligned.
    w1p = jnp.zeros((3 * fpad, mlp_pad), jnp.float32)
    for k in range(3):
        w1p = w1p.at[k * fpad:k * fpad + hidden, :mlp_in].set(
            w1[k * hidden:(k + 1) * hidden, :])
    b1p = _pad2(b1, 1, mlp_pad)
    w2p = _pad2(w2, mlp_pad, out_dim)

    args = (x0, adj, w_s, asrc_s, adst_s, bias_s, gam_s, bet_s, rme_s, rva_s,
            memb_t, first_t, inv_cnt, w1p, b1p, w2p, b2)

    def _const(a):
        # Whole array as one block, resident across all layers.
        return pl.BlockSpec(a.shape, lambda l, nd=a.ndim: (0,) * nd)

    def _per_layer(a):
        # Stacked [L, ...] parameter indexed by the layer grid axis.
        return pl.BlockSpec((1,) + a.shape[1:], lambda l: (l, 0, 0))

    in_specs = ([_const(x0), _const(adj)]
                + [_per_layer(a) for a in (w_s, asrc_s, adst_s, bias_s,
                                           gam_s, bet_s, rme_s, rva_s)]
                + [_const(a) for a in (memb_t, first_t, inv_cnt,
                                       w1p, b1p, w2p, b2)])

    return pl.pallas_call(
        _gnn_stack_kernel,
        out_shape=jax.ShapeDtypeStruct((num_graphs, out_dim), jnp.float32),
        grid=(num_layers,),
        in_specs=in_specs,
        out_specs=pl.BlockSpec((num_graphs, out_dim), lambda l: (0, 0)),
        scratch_shapes=[pltpu.VMEM((npad, fpad), jnp.float32)],
        compiler_params=pltpu.CompilerParams(
            dimension_semantics=("arbitrary",),
            vmem_limit_bytes=64 * 1024 * 1024),
    )(*args)


# ---------------------------------------------------------------------------
# Deterministic parameter construction (shapes match GNNStack.__init__)
# ---------------------------------------------------------------------------
def make_params(key, input_dim, hidden_dim, output_dim, num_layers=10):
    def glorot(k, shape):
        fan_in, fan_out = shape
        lim = jnp.sqrt(6.0 / (fan_in + fan_out))
        return jax.random.uniform(k, shape, jnp.float32, -lim, lim)

    layer_params = []
    for l in range(num_layers):
        fin = input_dim if l == 0 else hidden_dim
        key, kw, ks, kd, kg, kb, km, kv = jax.random.split(key, 8)
        w = glorot(kw, (fin, hidden_dim))
        a_src = glorot(ks, (1, hidden_dim))
        a_dst = glorot(kd, (1, hidden_dim))
        bias = jnp.zeros((1, hidden_dim), jnp.float32)
        gamma = 1.0 + 0.1 * jax.random.normal(kg, (1, hidden_dim), jnp.float32)
        beta = 0.1 * jax.random.normal(kb, (1, hidden_dim), jnp.float32)
        rmean = 0.1 * jax.random.normal(km, (1, hidden_dim), jnp.float32)
        rvar = 1.0 + 0.1 * jax.random.uniform(kv, (1, hidden_dim), jnp.float32)
        layer_params.append((w, a_src, a_dst, bias, gamma, beta, rmean, rvar))

    key, k1, k2, k3, k4 = jax.random.split(key, 5)
    h3 = 3 * hidden_dim
    w1 = glorot(k1, (h3, h3))
    b1 = 0.01 * jax.random.normal(k2, (1, h3), jnp.float32)
    w2 = glorot(k3, (h3, output_dim))
    b2 = 0.01 * jax.random.normal(k4, (1, output_dim), jnp.float32)
    return layer_params, (w1, b1, w2, b2)


# ---------------------------------------------------------------------------
if __name__ == "__main__":
    input_dim, hidden_dim, output_dim = 8, 32, 4
    num_nodes_per_graph, num_graphs = 8, 2
    n = num_nodes_per_graph * num_graphs

    key = jax.random.PRNGKey(0)
    key, kx = jax.random.split(key)
    x = jax.random.normal(kx, (n, input_dim), jnp.float32)

    # Two ring graphs (bidirectional edges).
    src, dst = [], []
    for g in range(num_graphs):
        base = g * num_nodes_per_graph
        for i in range(num_nodes_per_graph):
            j = (i + 1) % num_nodes_per_graph
            src += [base + i, base + j]
            dst += [base + j, base + i]
    edge_index = jnp.array([src, dst], dtype=jnp.int32)          # [2, 32]
    batch = jnp.array([g for g in range(num_graphs)
                       for _ in range(num_nodes_per_graph)], dtype=jnp.int32)

    layer_params, mlp_params = make_params(key, input_dim, hidden_dim, output_dim)

    fwd = jax.jit(functools.partial(gnn_stack_forward, num_graphs=num_graphs))
    out = fwd(x, edge_index, batch, layer_params, mlp_params)
    out = jax.block_until_ready(out)

    assert out.shape == (num_graphs, output_dim), out.shape
    assert bool(jnp.all(jnp.isfinite(out)))
    # rows of log_softmax should exp-sum to 1
    assert bool(jnp.allclose(jnp.sum(jnp.exp(out), axis=1), 1.0, atol=1e-4))
    print("KERNEL_OK")
</pallas_src>

<mosaic_0001>
module attributes {stable_mosaic.version = 11 : i64} {
  func.func @_gnn_stack_kernel(%arg0: i32, %arg1: memref<16x128xf32, #tpu.memory_space<vmem>>, %arg2: memref<16x16xbf16, #tpu.memory_space<vmem>>, %arg3: memref<1x128x128xf32, #tpu.memory_space<vmem>>, %arg4: memref<1x1x128xf32, #tpu.memory_space<vmem>>, %arg5: memref<1x1x128xf32, #tpu.memory_space<vmem>>, %arg6: memref<1x1x128xf32, #tpu.memory_space<vmem>>, %arg7: memref<1x1x128xf32, #tpu.memory_space<vmem>>, %arg8: memref<1x1x128xf32, #tpu.memory_space<vmem>>, %arg9: memref<1x1x128xf32, #tpu.memory_space<vmem>>, %arg10: memref<1x1x128xf32, #tpu.memory_space<vmem>>, %arg11: memref<2x16xf32, #tpu.memory_space<vmem>>, %arg12: memref<2x16xf32, #tpu.memory_space<vmem>>, %arg13: memref<2x1xf32, #tpu.memory_space<vmem>>, %arg14: memref<384x128xf32, #tpu.memory_space<vmem>>, %arg15: memref<1x128xf32, #tpu.memory_space<vmem>>, %arg16: memref<128x4xf32, #tpu.memory_space<vmem>>, %arg17: memref<1x4xf32, #tpu.memory_space<vmem>>, %arg18: memref<2x4xf32, #tpu.memory_space<vmem>>, %arg19: memref<16x128xf32, #tpu.memory_space<vmem>>) attributes {dimension_semantics = [#tpu.dimension_semantics<arbitrary>], iteration_bounds = array<i64: 10>, scalar_prefetch = 0 : i64, scratch_operands = 1 : i64, tpu.core_type = #tpu.core_type<tc>, window_params = [{pipeline_mode = #tpu.pipeline_mode<synchronous>, transform_indices = @transform_0, window_bounds = array<i64: 16, 128>}, {pipeline_mode = #tpu.pipeline_mode<synchronous>, transform_indices = @transform_1, window_bounds = array<i64: 16, 16>}, {transform_indices = @transform_2, window_bounds = array<i64: 1, 128, 128>}, {transform_indices = @transform_3, window_bounds = array<i64: 1, 1, 128>}, {transform_indices = @transform_4, window_bounds = array<i64: 1, 1, 128>}, {transform_indices = @transform_5, window_bounds = array<i64: 1, 1, 128>}, {transform_indices = @transform_6, window_bounds = array<i64: 1, 1, 128>}, {transform_indices = @transform_7, window_bounds = array<i64: 1, 1, 128>}, {transform_indices = @transform_8, window_bounds = array<i64: 1, 1, 128>}, {transform_indices = @transform_9, window_bounds = array<i64: 1, 1, 128>}, {pipeline_mode = #tpu.pipeline_mode<synchronous>, transform_indices = @transform_10, window_bounds = array<i64: 2, 16>}, {pipeline_mode = #tpu.pipeline_mode<synchronous>, transform_indices = @transform_11, window_bounds = array<i64: 2, 16>}, {pipeline_mode = #tpu.pipeline_mode<synchronous>, transform_indices = @transform_12, window_bounds = array<i64: 2, 1>}, {pipeline_mode = #tpu.pipeline_mode<synchronous>, transform_indices = @transform_13, window_bounds = array<i64: 384, 128>}, {pipeline_mode = #tpu.pipeline_mode<synchronous>, transform_indices = @transform_14, window_bounds = array<i64: 1, 128>}, {pipeline_mode = #tpu.pipeline_mode<synchronous>, transform_indices = @transform_15, window_bounds = array<i64: 128, 4>}, {pipeline_mode = #tpu.pipeline_mode<synchronous>, transform_indices = @transform_16, window_bounds = array<i64: 1, 4>}, {pipeline_mode = #tpu.pipeline_mode<synchronous>, transform_indices = @transform_17, window_bounds = array<i64: 2, 4>}]} {
    %c0_i32 = arith.constant 0 : i32
    %0 = arith.cmpi eq, %arg0, %c0_i32 : i32
    %1 = arith.extui %0 : i1 to i32
    %c0_i32_0 = arith.constant 0 : i32
    %2 = arith.cmpi ne, %1, %c0_i32_0 : i32
    scf.if %2 {
      %c0_42 = arith.constant 0 : index
      %c0_43 = arith.constant 0 : index
      %75 = vector.load %arg1[%c0_42, %c0_43] : memref<16x128xf32, #tpu.memory_space<vmem>>, vector<16x128xf32>
      %c0_44 = arith.constant 0 : index
      %c0_45 = arith.constant 0 : index
      %76 = vector.load %arg19[%c0_44, %c0_45] : memref<16x128xf32, #tpu.memory_space<vmem>>, vector<16x128xf32>
      tpu.vector_store %arg19[%c0_44, %c0_45], %75 {strides = array<i32>} : memref<16x128xf32, #tpu.memory_space<vmem>>, vector<16x128xf32>,
    } else {
    }
    %c0 = arith.constant 0 : index
    %c0_1 = arith.constant 0 : index
    %3 = vector.load %arg19[%c0, %c0_1] : memref<16x128xf32, #tpu.memory_space<vmem>>, vector<16x128xf32>
    %c0_2 = arith.constant 0 : index
    %c0_3 = arith.constant 0 : index
    %c0_4 = arith.constant 0 : index
    %4 = vector.load %arg3[%c0_2, %c0_3, %c0_4] : memref<1x128x128xf32, #tpu.memory_space<vmem>>, vector<1x128x128xf32>
    %5 = vector.shape_cast %4 : vector<1x128x128xf32> to vector<128x128xf32>
    %6 = arith.truncf %3 : vector<16x128xf32> to vector<16x128xbf16>
    %7 = arith.truncf %5 : vector<128x128xf32> to vector<128x128xbf16>
    %cst = arith.constant dense<0.000000e+00> : vector<16x128xf32>
    %8 = tpu.matmul %6, %7, %cst {dimension_numbers = #tpu.dot_dimension_numbers<[1], [0], [0], [1], [0, 0, 1, 1], [], []>} : vector<16x128xbf16>, vector<128x128xbf16>, vector<16x128xf32> -> vector<16x128xf32>
    %9 = arith.truncf %8 : vector<16x128xf32> to vector<16x128xbf16>
    %c0_5 = arith.constant 0 : index
    %c0_6 = arith.constant 0 : index
    %c0_7 = arith.constant 0 : index
    %10 = vector.load %arg5[%c0_5, %c0_6, %c0_7] : memref<1x1x128xf32, #tpu.memory_space<vmem>>, vector<1x1x128xf32>
    %11 = vector.shape_cast %10 : vector<1x1x128xf32> to vector<1x128xf32>
    %12 = vector.broadcast %11 : vector<1x128xf32> to vector<16x128xf32>
    %13 = arith.mulf %8, %12 : vector<16x128xf32>
    %cst_8 = arith.constant dense<0.000000e+00> : vector<16xf32>
    %14 = vector.multi_reduction <add>, %13, %cst_8 [1] : vector<16x128xf32> to vector<16xf32>
    %15 = vector.shape_cast %14 : vector<16xf32> to vector<16x1xf32>
    %c0_9 = arith.constant 0 : index
    %c0_10 = arith.constant 0 : index
    %c0_11 = arith.constant 0 : index
    %16 = vector.load %arg4[%c0_9, %c0_10, %c0_11] : memref<1x1x128xf32, #tpu.memory_space<vmem>>, vector<1x1x128xf32>
    %17 = vector.shape_cast %16 : vector<1x1x128xf32> to vector<1x128xf32>
    %18 = arith.truncf %17 : vector<1x128xf32> to vector<1x128xbf16>
    %cst_12 = arith.constant dense<0.000000e+00> : vector<1x16xf32>
    %19 = tpu.matmul %18, %9, %cst_12 {dimension_numbers = #tpu.dot_dimension_numbers<[1], [1], [0], [0], [0, 0, 1, 0], [], []>} : vector<1x128xbf16>, vector<16x128xbf16>, vector<1x16xf32> -> vector<1x16xf32>
    %20 = vector.broadcast %15 : vector<16x1xf32> to vector<16x16xf32>
    %21 = vector.broadcast %19 : vector<1x16xf32> to vector<16x16xf32>
    %22 = arith.addf %20, %21 : vector<16x16xf32>
    %cst_13 = arith.constant 0.000000e+00 : f32
    %23 = vector.broadcast %cst_13 : f32 to vector<16x16xf32>
    %24 = arith.cmpf ogt, %22, %23 : vector<16x16xf32>
    %cst_14 = arith.constant 2.000000e-01 : f32
    %25 = vector.broadcast %cst_14 : f32 to vector<16x16xf32>
    %26 = arith.mulf %25, %22 : vector<16x16xf32>
    %27 = arith.select %24, %22, %26 : vector<16x16xi1>, vector<16x16xf32>
    %c0_15 = arith.constant 0 : index
    %c0_16 = arith.constant 0 : index
    %28 = vector.load %arg2[%c0_15, %c0_16] : memref<16x16xbf16, #tpu.memory_space<vmem>>, vector<16x16xbf16>
    %29 = arith.extf %28 : vector<16x16xbf16> to vector<16x16xf32>
    %cst_17 = arith.constant 0.000000e+00 : f32
    %30 = vector.broadcast %cst_17 : f32 to vector<16x16xf32>
    %31 = arith.cmpf ogt, %29, %30 : vector<16x16xf32>
    %cst_18 = arith.constant -1.000000e+30 : f32
    %32 = vector.broadcast %cst_18 : f32 to vector<16x16xf32>
    %33 = arith.select %31, %27, %32 : vector<16x16xi1>, vector<16x16xf32>
    %cst_19 = arith.constant dense<0xFF800000> : vector<16xf32>
    %34 = vector.multi_reduction <maximumf>, %33, %cst_19 [1] : vector<16x16xf32> to vector<16xf32>
    %35 = vector.shape_cast %34 : vector<16xf32> to vector<16x1xf32>
    %36 = vector.broadcast %35 : vector<16x1xf32> to vector<16x16xf32>
    %37 = arith.subf %33, %36 : vector<16x16xf32>
    %38 = math.exp %37 : vector<16x16xf32>
    %cst_20 = arith.constant dense<0.000000e+00> : vector<16xf32>
    %39 = vector.multi_reduction <add>, %38, %cst_20 [1] : vector<16x16xf32> to vector<16xf32>
    %40 = vector.shape_cast %39 : vector<16xf32> to vector<16x1xf32>
    %41 = tpu.reciprocal %40 {approx = true} : vector<16x1xf32> -> vector<16x1xf32>
    %42 = vector.broadcast %41 : vector<16x1xf32> to vector<16x16xf32>
    %43 = arith.mulf %38, %42 : vector<16x16xf32>
    %44 = arith.truncf %43 : vector<16x16xf32> to vector<16x16xbf16>
    %cst_21 = arith.constant dense<0.000000e+00> : vector<16x128xf32>
    %45 = tpu.matmul %44, %9, %cst_21 {dimension_numbers = #tpu.dot_dimension_numbers<[1], [0], [0], [1], [0, 0, 1, 1], [], []>} : vector<16x16xbf16>, vector<16x128xbf16>, vector<16x128xf32> -> vector<16x128xf32>
    %c0_22 = arith.constant 0 : index
    %c0_23 = arith.constant 0 : index
    %c0_24 = arith.constant 0 : index
    %46 = vector.load %arg6[%c0_22, %c0_23, %c0_24] : memref<1x1x128xf32, #tpu.memory_space<vmem>>, vector<1x1x128xf32>
    %47 = vector.shape_cast %46 : vector<1x1x128xf32> to vector<1x128xf32>
    %48 = vector.broadcast %47 : vector<1x128xf32> to vector<16x128xf32>
    %49 = arith.addf %45, %48 : vector<16x128xf32>
    %cst_25 = arith.constant 0.000000e+00 : f32
    %50 = vector.broadcast %cst_25 : f32 to vector<16x128xf32>
    %51 = arith.maximumf %49, %50 : vector<16x128xf32>
    %c0_26 = arith.constant 0 : index
    %c0_27 = arith.constant 0 : index
    %c0_28 = arith.constant 0 : index
    %52 = vector.load %arg10[%c0_26, %c0_27, %c0_28] : memref<1x1x128xf32, #tpu.memory_space<vmem>>, vector<1x1x128xf32>
    %53 = vector.shape_cast %52 : vector<1x1x128xf32> to vector<1x128xf32>
    %cst_29 = arith.constant 9.99999974E-6 : f32
    %54 = vector.broadcast %cst_29 : f32 to vector<1x128xf32>
    %55 = arith.addf %53, %54 : vector<1x128xf32>
    %56 = math.rsqrt %55 : vector<1x128xf32>
    %c0_30 = arith.constant 0 : index
    %c0_31 = arith.constant 0 : index
    %c0_32 = arith.constant 0 : index
    %57 = vector.load %arg9[%c0_30, %c0_31, %c0_32] : memref<1x1x128xf32, #tpu.memory_space<vmem>>, vector<1x1x128xf32>
    %58 = vector.shape_cast %57 : vector<1x1x128xf32> to vector<1x128xf32>
    %59 = vector.broadcast %58 : vector<1x128xf32> to vector<16x128xf32>
    %60 = arith.subf %51, %59 : vector<16x128xf32>
    %61 = vector.broadcast %56 : vector<1x128xf32> to vector<16x128xf32>
    %62 = arith.mulf %60, %61 : vector<16x128xf32>
    %c0_33 = arith.constant 0 : index
    %c0_34 = arith.constant 0 : index
    %c0_35 = arith.constant 0 : index
    %63 = vector.load %arg7[%c0_33, %c0_34, %c0_35] : memref<1x1x128xf32, #tpu.memory_space<vmem>>, vector<1x1x128xf32>
    %64 = vector.shape_cast %63 : vector<1x1x128xf32> to vector<1x128xf32>
    %65 = vector.broadcast %64 : vector<1x128xf32> to vector<16x128xf32>
    %66 = arith.mulf %62, %65 : vector<16x128xf32>
    %c0_36 = arith.constant 0 : index
    %c0_37 = arith.constant 0 : index
    %c0_38 = arith.constant 0 : index
    %67 = vector.load %arg8[%c0_36, %c0_37, %c0_38] : memref<1x1x128xf32, #tpu.memory_space<vmem>>, vector<1x1x128xf32>
    %68 = vector.shape_cast %67 : vector<1x1x128xf32> to vector<1x128xf32>
    %69 = vector.broadcast %68 : vector<1x128xf32> to vector<16x128xf32>
    %70 = arith.addf %66, %69 : vector<16x128xf32>
    %c0_39 = arith.constant 0 : index
    %c0_40 = arith.constant 0 : index
    %71 = vector.load %arg19[%c0_39, %c0_40] : memref<16x128xf32, #tpu.memory_space<vmem>>, vector<16x128xf32>
    tpu.vector_store %arg19[%c0_39, %c0_40], %70 {strides = array<i32>} : memref<16x128xf32, #tpu.memory_space<vmem>>, vector<16x128xf32>,
    %c9_i32 = arith.constant 9 : i32
    %72 = arith.cmpi eq, %arg0, %c9_i32 : i32
    %73 = arith.extui %72 : i1 to i32
    %c0_i32_41 = arith.constant 0 : i32
    %74 = arith.cmpi ne, %73, %c0_i32_41 : i32
    scf.if %74 {
      %c0_42 = arith.constant 0 : index
      %c0_43 = arith.constant 0 : index
      %75 = vector.load %arg19[%c0_42, %c0_43] : memref<16x128xf32, #tpu.memory_space<vmem>>, vector<16x128xf32>
      %c0_44 = arith.constant 0 : index
      %c0_45 = arith.constant 0 : index
      %76 = vector.load %arg11[%c0_44, %c0_45] : memref<2x16xf32, #tpu.memory_space<vmem>>, vector<2x16xf32>
      %77 = vector.shape_cast %75 : vector<16x128xf32> to vector<1x16x128xf32>
      %78 = vector.shape_cast %77 : vector<1x16x128xf32> to vector<1x16x128xf32>
      %79 = vector.broadcast %78 : vector<1x16x128xf32> to vector<2x16x128xf32>
      %80 = vector.shape_cast %76 : vector<2x16xf32> to vector<2x16x1xf32>
      %cst_46 = arith.constant 0.000000e+00 : f32
      %81 = vector.broadcast %cst_46 : f32 to vector<2x16x1xf32>
      %82 = arith.cmpf ogt, %80, %81 : vector<2x16x1xf32>
      %83 = vector.shape_cast %82 : vector<2x16x1xi1> to vector<2x16x1xi1>
      %84 = vector.broadcast %83 : vector<2x16x1xi1> to vector<2x16x128xi1>
      %cst_47 = arith.constant -1.000000e+30 : f32
      %85 = vector.broadcast %cst_47 : f32 to vector<2x16x128xf32>
      %86 = arith.select %84, %79, %85 : vector<2x16x128xi1>, vector<2x16x128xf32>
      %cst_48 = arith.constant dense<0xFF800000> : vector<2x128xf32>
      %87 = vector.multi_reduction <maximumf>, %86, %cst_48 [1] : vector<2x16x128xf32> to vector<2x128xf32>
      %cst_49 = arith.constant dense<0.000000e+00> : vector<2x128xf32>
      %88 = tpu.matmul %76, %75, %cst_49 {dimension_numbers = #tpu.dot_dimension_numbers<[1], [0], [0], [1], [0, 0, 1, 1], [], []>} : vector<2x16xf32>, vector<16x128xf32>, vector<2x128xf32> -> vector<2x128xf32>
      %c0_50 = arith.constant 0 : index
      %c0_51 = arith.constant 0 : index
      %89 = vector.load %arg13[%c0_50, %c0_51] : memref<2x1xf32, #tpu.memory_space<vmem>>, vector<2x1xf32>
      %90 = vector.broadcast %89 : vector<2x1xf32> to vector<2x128xf32>
      %91 = arith.mulf %88, %90 : vector<2x128xf32>
      %c0_52 = arith.constant 0 : index
      %c0_53 = arith.constant 0 : index
      %92 = vector.load %arg12[%c0_52, %c0_53] : memref<2x16xf32, #tpu.memory_space<vmem>>, vector<2x16xf32>
      %cst_54 = arith.constant dense<0.000000e+00> : vector<2x128xf32>
      %93 = tpu.matmul %92, %75, %cst_54 {dimension_numbers = #tpu.dot_dimension_numbers<[1], [0], [0], [1], [0, 0, 1, 1], [], []>} : vector<2x16xf32>, vector<16x128xf32>, vector<2x128xf32> -> vector<2x128xf32>
      %94 = tpu.concatenate %87, %91, %93 in 1 : vector<2x128xf32>, vector<2x128xf32>, vector<2x128xf32> -> vector<2x384xf32>
      %c0_55 = arith.constant 0 : index
      %c0_56 = arith.constant 0 : index
      %95 = vector.load %arg14[%c0_55, %c0_56] : memref<384x128xf32, #tpu.memory_space<vmem>>, vector<384x128xf32>
      %cst_57 = arith.constant dense<0.000000e+00> : vector<2x128xf32>
      %96 = tpu.matmul %94, %95, %cst_57 {dimension_numbers = #tpu.dot_dimension_numbers<[1], [0], [0], [1], [0, 0, 1, 1], [], []>} : vector<2x384xf32>, vector<384x128xf32>, vector<2x128xf32> -> vector<2x128xf32>
      %c0_58 = arith.constant 0 : index
      %c0_59 = arith.constant 0 : index
      %97 = vector.load %arg15[%c0_58, %c0_59] : memref<1x128xf32, #tpu.memory_space<vmem>>, vector<1x128xf32>
      %98 = vector.broadcast %97 : vector<1x128xf32> to vector<2x128xf32>
      %99 = arith.addf %96, %98 : vector<2x128xf32>
      %c0_60 = arith.constant 0 : index
      %c0_61 = arith.constant 0 : index
      %100 = vector.load %arg16[%c0_60, %c0_61] : memref<128x4xf32, #tpu.memory_space<vmem>>, vector<128x4xf32>
      %cst_62 = arith.constant dense<0.000000e+00> : vector<2x4xf32>
      %101 = tpu.matmul %99, %100, %cst_62 {dimension_numbers = #tpu.dot_dimension_numbers<[1], [0], [0], [1], [0, 0, 1, 1], [], []>} : vector<2x128xf32>, vector<128x4xf32>, vector<2x4xf32> -> vector<2x4xf32>
      %c0_63 = arith.constant 0 : index
      %c0_64 = arith.constant 0 : index
      %102 = vector.load %arg17[%c0_63, %c0_64] : memref<1x4xf32, #tpu.memory_space<vmem>>, vector<1x4xf32>
      %103 = vector.broadcast %102 : vector<1x4xf32> to vector<2x4xf32>
      %104 = arith.addf %101, %103 : vector<2x4xf32>
      %cst_65 = arith.constant dense<0xFF800000> : vector<2xf32>
      %105 = vector.multi_reduction <maximumf>, %104, %cst_65 [1] : vector<2x4xf32> to vector<2xf32>
      %106 = vector.shape_cast %105 : vector<2xf32> to vector<2x1xf32>
      %107 = vector.broadcast %106 : vector<2x1xf32> to vector<2x4xf32>
      %108 = arith.subf %104, %107 : vector<2x4xf32>
      %109 = math.exp %108 : vector<2x4xf32>
      %cst_66 = arith.constant dense<0.000000e+00> : vector<2xf32>
      %110 = vector.multi_reduction <add>, %109, %cst_66 [1] : vector<2x4xf32> to vector<2xf32>
      %111 = vector.shape_cast %110 : vector<2xf32> to vector<2x1xf32>
      %112 = math.log %111 : vector<2x1xf32>
      %113 = vector.broadcast %112 : vector<2x1xf32> to vector<2x4xf32>
      %114 = arith.subf %108, %113 : vector<2x4xf32>
      %c0_67 = arith.constant 0 : index
      %c0_68 = arith.constant 0 : index
      %115 = vector.load %arg18[%c0_67, %c0_68] : memref<2x4xf32, #tpu.memory_space<vmem>>, vector<2x4xf32>
      tpu.vector_store %arg18[%c0_67, %c0_68], %114 {strides = array<i32>} : memref<2x4xf32, #tpu.memory_space<vmem>>, vector<2x4xf32>,
    } else {
    }
    return
  }
  func.func @transform_0(%arg0: i32) -> (i32, i32) {
    %c0_i32 = arith.constant 0 : i32
    %c0_i32_0 = arith.constant 0 : i32
    %c0_i32_1 = arith.constant 0 : i32
    return %c0_i32, %c0_i32_0 : i32, i32
  }
  func.func @transform_1(%arg0: i32) -> (i32, i32) {
    %c0_i32 = arith.constant 0 : i32
    %c0_i32_0 = arith.constant 0 : i32
    %c0_i32_1 = arith.constant 0 : i32
    return %c0_i32, %c0_i32_0 : i32, i32
  }
  func.func @transform_2(%arg0: i32) -> (i32, i32, i32) {
    %c0_i32 = arith.constant 0 : i32
    %c0_i32_0 = arith.constant 0 : i32
    %c0_i32_1 = arith.constant 0 : i32
    return %arg0, %c0_i32, %c0_i32_0 : i32, i32, i32
  }
  func.func @transform_3(%arg0: i32) -> (i32, i32, i32) {
    %c0_i32 = arith.constant 0 : i32
    %c0_i32_0 = arith.constant 0 : i32
    %c0_i32_1 = arith.constant 0 : i32
    return %arg0, %c0_i32, %c0_i32_0 : i32, i32, i32
  }
  func.func @transform_4(%arg0: i32) -> (i32, i32, i32) {
    %c0_i32 = arith.constant 0 : i32
    %c0_i32_0 = arith.constant 0 : i32
    %c0_i32_1 = arith.constant 0 : i32
    return %arg0, %c0_i32, %c0_i32_0 : i32, i32, i32
  }
  func.func @transform_5(%arg0: i32) -> (i32, i32, i32) {
    %c0_i32 = arith.constant 0 : i32
    %c0_i32_0 = arith.constant 0 : i32
    %c0_i32_1 = arith.constant 0 : i32
    return %arg0, %c0_i32, %c0_i32_0 : i32, i32, i32
  }
  func.func @transform_6(%arg0: i32) -> (i32, i32, i32) {
    %c0_i32 = arith.constant 0 : i32
    %c0_i32_0 = arith.constant 0 : i32
    %c0_i32_1 = arith.constant 0 : i32
    return %arg0, %c0_i32, %c0_i32_0 : i32, i32, i32
  }
  func.func @transform_7(%arg0: i32) -> (i32, i32, i32) {
    %c0_i32 = arith.constant 0 : i32
    %c0_i32_0 = arith.constant 0 : i32
    %c0_i32_1 = arith.constant 0 : i32
    return %arg0, %c0_i32, %c0_i32_0 : i32, i32, i32
  }
  func.func @transform_8(%arg0: i32) -> (i32, i32, i32) {
    %c0_i32 = arith.constant 0 : i32
    %c0_i32_0 = arith.constant 0 : i32
    %c0_i32_1 = arith.constant 0 : i32
    return %arg0, %c0_i32, %c0_i32_0 : i32, i32, i32
  }
  func.func @transform_9(%arg0: i32) -> (i32, i32, i32) {
    %c0_i32 = arith.constant 0 : i32
    %c0_i32_0 = arith.constant 0 : i32
    %c0_i32_1 = arith.constant 0 : i32
    return %arg0, %c0_i32, %c0_i32_0 : i32, i32, i32
  }
  func.func @transform_10(%arg0: i32) -> (i32, i32) {
    %c0_i32 = arith.constant 0 : i32
    %c0_i32_0 = arith.constant 0 : i32
    %c0_i32_1 = arith.constant 0 : i32
    return %c0_i32, %c0_i32_0 : i32, i32
  }
  func.func @transform_11(%arg0: i32) -> (i32, i32) {
    %c0_i32 = arith.constant 0 : i32
    %c0_i32_0 = arith.constant 0 : i32
    %c0_i32_1 = arith.constant 0 : i32
    return %c0_i32, %c0_i32_0 : i32, i32
  }
  func.func @transform_12(%arg0: i32) -> (i32, i32) {
    %c0_i32 = arith.constant 0 : i32
    %c0_i32_0 = arith.constant 0 : i32
    %c0_i32_1 = arith.constant 0 : i32
    return %c0_i32, %c0_i32_0 : i32, i32
  }
  func.func @transform_13(%arg0: i32) -> (i32, i32) {
    %c0_i32 = arith.constant 0 : i32
    %c0_i32_0 = arith.constant 0 : i32
    %c0_i32_1 = arith.constant 0 : i32
    return %c0_i32, %c0_i32_0 : i32, i32
  }
  func.func @transform_14(%arg0: i32) -> (i32, i32) {
    %c0_i32 = arith.constant 0 : i32
    %c0_i32_0 = arith.constant 0 : i32
    %c0_i32_1 = arith.constant 0 : i32
    return %c0_i32, %c0_i32_0 : i32, i32
  }
  func.func @transform_15(%arg0: i32) -> (i32, i32) {
    %c0_i32 = arith.constant 0 : i32
    %c0_i32_0 = arith.constant 0 : i32
    %c0_i32_1 = arith.constant 0 : i32
    return %c0_i32, %c0_i32_0 : i32, i32
  }
  func.func @transform_16(%arg0: i32) -> (i32, i32) {
    %c0_i32 = arith.constant 0 : i32
    %c0_i32_0 = arith.constant 0 : i32
    %c0_i32_1 = arith.constant 0 : i32
    return %c0_i32, %c0_i32_0 : i32, i32
  }
  func.func @transform_17(%arg0: i32) -> (i32, i32) {
    %c0_i32 = arith.constant 0 : i32
    %c0_i32_0 = arith.constant 0 : i32
    %c0_i32_1 = arith.constant 0 : i32
    return %c0_i32, %c0_i32_0 : i32, i32
  }
}

</mosaic_0001>

<bundles_post_ra>
// kernel: gnn_stack_forward.1
= control target key start
LH: loop header
LB: loop body
LE: loop exit
PB: predicated region body
PF: predicated region fallthrough
CT: control target
= control target key end

     0   :  { %s2340_s0 = inlined_call_operand.vmem [shape: f32[16,128], index: 0, kind: input, shape index: {}]   ;;  %s2341_s1 = inlined_call_operand.vmem [shape: bf16[16,16], index: 1, kind: input, shape index: {}]   ;;  %s2342_s2 = inlined_call_operand.vmem [shape: f32[10,128,128], index: 2, kind: input, shape index: {}]   ;;  %s2343_s3 = inlined_call_operand.vmem [shape: f32[10,1,128], index: 3, kind: input, shape index: {}]   ;;  %s2344_s4 = inlined_call_operand.vmem [shape: f32[10,1,128], index: 4, kind: input, shape index: {}]   ;;  %s2345_s5 = inlined_call_operand.vmem [shape: f32[10,1,128], index: 5, kind: input, shape index: {}]   ;;  %s2346_s6 = inlined_call_operand.vmem [shape: f32[10,1,128], index: 6, kind: input, shape index: {}]   ;;  %s2347_s7 = inlined_call_operand.vmem [shape: f32[10,1,128], index: 7, kind: input, shape index: {}]   ;;  %s2348_s8 = inlined_call_operand.vmem [shape: f32[10,1,128], index: 8, kind: input, shape index: {}]   ;;  %s2349_s9 = inlined_call_operand.vmem [shape: f32[10,1,128], index: 9, kind: input, shape index: {}]   ;;  %s2350_s10 = inlined_call_operand.vmem [shape: f32[2,16], index: 10, kind: input, shape index: {}]   ;;  %s2351_s11 = inlined_call_operand.vmem [shape: f32[2,16], index: 11, kind: input, shape index: {}]   ;;  %s2352_s12 = inlined_call_operand.vmem [shape: f32[2,1], index: 12, kind: input, shape index: {}]   ;;  %s2353_s13 = inlined_call_operand.vmem [shape: f32[384,128], index: 13, kind: input, shape index: {}]   ;;  %s2354_s14 = inlined_call_operand.vmem [shape: f32[1,128], index: 14, kind: input, shape index: {}]   ;;  %s2355_s15 = inlined_call_operand.vmem [shape: f32[128,4], index: 15, kind: input, shape index: {}]   ;;  %s2356_s16 = inlined_call_operand.vmem [shape: f32[1,4], index: 16, kind: input, shape index: {}]   ;;  %s2357_s17 = inlined_call_operand.hbm [shape: f32[2,4], index: 17, kind: output, shape index: {}]  }
   0x1   :  { %2361 = sst [smem:[#allocation7_spill]] %s2340_s0 }
   0x2   :  { %2362 = sst [smem:[#allocation8_spill]] %s2341_s1 }
   0x3   :  { %2363 = sst [smem:[#allocation9_spill]] %s2342_s2 }
   0x4   :  { %2364 = sst [smem:[#allocation10_spill]] %s2354_s14 }
   0x5   :  { %2365 = sst [smem:[#allocation11_spill]] %s2355_s15 }
   0x6   :  { %2366 = sst [smem:[#allocation12_spill]] %s2356_s16 }
   0x7   :  { %2367 = sst [smem:[#allocation13_spill]] %s2357_s17 }
   0x8   :  { %22 = vsyncpa [#allocation4], 0  ;;  %s1930_s24 = smov 0  }
   0x9 LB: > { %2368 = sst [smem:[#allocation6_spill]] %s1832_s24  ;;  %s1936_s25 = sadd.s32 4294967295, %s1832_s24   ;;  %s1832_s24 = sphi %s1930_s24, %s28_s24  }
   0xa   : > { %p1535_p0 = scmp.ge.s32.totalorder %s1832_s24, 1  ;;  %p539_p1 = scmp.lt.s32.totalorder %s1832_s24, 11 }
   0xc   : > { %p540_p2 = pnand %p1535_p0, %p539_p1 }
   0xd   : > { %p607_p3 = scmp.lt.s32.totalorder (!%p540_p2), %s1936_s25, 9  ;;  %s2369_s2 = sld [smem:[#allocation9_spill]] (!%p540_p2) }
   0xe   : > { %543 = sbr.rel (%p540_p2) target bundleno = 1935 (0x78f), region = 88  ;;  %p1538_p4 = scmp.ne.s32.totalorder (!%p540_p2), %s1936_s25, 0 }
  0x13   : > { %s1942_s26 = scalar_select %p607_p3, %s1936_s25, 9 }
  0x14   : > { %637 = sbr.rel (%p1538_p4) target bundleno = 28 (0x1c), region = 92  ;;  %s2370_s23 = sld [smem:[#allocation7_spill]] (!%p1538_p4) }
  0x15   : > { %s1554_s27 = sshll.u32 %s1942_s26, 7  ;;  %s617_s21 = scalar_lea.vmem %s2344_s4, %s1942_s26 }
  0x16   : > { %s1952_s19 = scalar_lea.vmem %s2369_s2, %s1554_s27  ;;  %s620_s24 = scalar_lea.vmem %s2345_s5, %s1942_s26 }
  0x17   : > { %s623_s14 = scalar_lea.vmem %s2346_s6, %s1942_s26  ;;  %s626_s29 = scalar_lea.vmem %s2347_s7, %s1942_s26 }
  0x18   : > { %s629_s27 = scalar_lea.vmem %s2348_s8, %s1942_s26  ;;  %s632_s1 = scalar_lea.vmem %s2349_s9, %s1942_s26 }
  0x1a   : > { %v638_v0 = vld [vmem:[%s2370_s23] sm:$0xff]  ;;  %v639_v1 = vld [vmem:[%s2370_s23 + $0x8] sm:$0xff] }
  0x1b   : > { %640 = vst [vmem:[#allocation2] sm:$0xff] %v638_v0  ;;  %641 = vst [vmem:[#allocation2 + $0x8] sm:$0xff] %v639_v1 }
  0x1c PF: > { %v658_v2 = vld [vmem:[%s1952_s19 + $0x70] sm:$0xff]  ;;  %v659_v3 = vld [vmem:[%s1952_s19 + $0x78] sm:$0xff]  ;;  %v656_v4 = vld [vmem:[%s1952_s19 + $0x60] sm:$0xff]  ;;  %v1834_v5 = vmov 0.0   ;;  %vm1835_vm0 = vmmov 0   ;;  %s2371_s28 = scalar_lea.vmem %s2343_s3, %s1942_s26  ;;  %v766_v40 = vlaneseq  ;;  %s2372_s18 = sld [smem:[#allocation8_spill]] }
  0x1d   : > { %1647 = vmatprep.subr.bf16.mxu0 %v1834_v5  ;;  %v668_v6 = vpack.c.bf16 %v659_v3, %v658_v2  ;;  %v657_v7 = vld [vmem:[%s1952_s19 + $0x68] sm:$0xff]  ;;  %1663 = vmatprep.mubr.msk.bf16.mxu0 %vm1835_vm0, %v1834_v5  ;;  %v654_v9 = vld [vmem:[%s1952_s19 + $0x50] sm:$0xff]  ;;  %v655_v10 = vld [vmem:[%s1952_s19 + $0x58] sm:$0xff]  ;;  %vm786_vm4 = vcmask 130048   ;;  %p1545_p5 = scmp.ne.s32.totalorder %s1936_s25, 9 }
  0x1e   : > { %1667 = vmatprep.subr.bf16.mxu1 %v1834_v5  ;;  %1669 = vmatprep.mubr.msk.bf16.mxu1 %vm1835_vm0, %v1834_v5  ;;  %v667_v8 = vpack.c.bf16 %v657_v7, %v656_v4  ;;  %v666_v11 = vpack.c.bf16 %v655_v10, %v654_v9  ;;  %v652_v12 = vld [vmem:[%s1952_s19 + $0x40] sm:$0xff]  ;;  %v653_v13 = vld [vmem:[%s1952_s19 + $0x48] sm:$0xff]  ;;  %v650_v15 = vld [vmem:[%s1952_s19 + $0x30] sm:$0xff]  ;;  %v2014_v41 = vshrl.u32 %v766_v40, 7  ;;  %s2374_s2 = sld [smem:[#allocation10_spill]] (!%p1545_p5) }
  0x1f   : > { %1648 = vmatpush3.bf16.msra.mxu0 %v668_v6  ;;  %v665_v14 = vpack.c.bf16 %v653_v13, %v652_v12  ;;  %v651_v16 = vld [vmem:[%s1952_s19 + $0x38] sm:$0xff]  ;;  %v648_v18 = vld [vmem:[%s1952_s19 + $0x20] sm:$0xff]  ;;  %v649_v19 = vld [vmem:[%s1952_s19 + $0x28] sm:$0xff] }
  0x20   : > { %1649 = vmatprep.subr.bf16.mxu0 %v1834_v5  ;;  %v664_v17 = vpack.c.bf16 %v651_v16, %v650_v15  ;;  %v663_v20 = vpack.c.bf16 %v649_v19, %v648_v18  ;;  %v646_v21 = vld [vmem:[%s1952_s19 + $0x10] sm:$0xff]  ;;  %v647_v22 = vld [vmem:[%s1952_s19 + $0x18] sm:$0xff]  ;;  %v644_v24 = vld [vmem:[%s1952_s19] sm:$0xff]  ;;  %v2017_v43 = vsub.s32 0, %v2014_v41 }
  0x21   : > { %v662_v23 = vpack.c.bf16 %v647_v22, %v646_v21  ;;  %v645_v25 = vld [vmem:[%s1952_s19 + $0x8] sm:$0xff]  ;;  %v1539_v30 = vld [vmem:[%s617_s21] ss:$0 sm:$0xff] }
  0x22   : > { %v661_v26 = vpack.c.bf16 %v645_v25, %v644_v24  ;;  %v642_v27 = vld [vmem:[#allocation2] sm:$0xff]  ;;  %v643_v28 = vld [vmem:[#allocation2 + $0x8] sm:$0xff] }
  0x23   : > { %1650 = vmatpush3.bf16.msra.mxu0 %v667_v8  ;;  %v660_v29 = vpack.c.bf16 %v643_v28, %v642_v27  ;;  %v724_v38 = vld [vmem:[%s2371_s28] sm:$0x1] }
  0x24   : > { %1651 = vmatprep.subr.bf16.mxu0 %v1834_v5  ;;  %v725_v39 = vpack.c.bf16 %v724_v38, %v724_v38  ;;  %v1556_v44 = vld [vmem:[%s2372_s18] sm:$0xff]  }
  0x25   : > { %v1557_v46 = vunpack.c.l.bf16 %v1556_v44  ;;  %v1558_v52 = vunpack.c.h.bf16 %v1556_v44  ;;  %v863_v16 = vld [vmem:[%s632_s1] sm:$0x1]  ;;  %s2373_s1 = sld [smem:[#allocation11_spill]] (!%p1545_p5) }
  0x26   : > { %v1540_v18 = vld [vmem:[%s620_s24] ss:$0 sm:$0xff]  ;;  %s2375_s24 = sld [smem:[#allocation12_spill]] (!%p1545_p5) }
  0x27   : > { %1652 = vmatpush3.bf16.msra.mxu0 %v666_v11  ;;  %vm782_vm1 = vcmp.gt.f32.partialorder %v1557_v46, 0.0  ;;  %vm783_vm5 = vcmp.gt.f32.partialorder %v1558_v52, 0.0  ;;  %v1542_v22 = vld [vmem:[%s629_s27] ss:$0 sm:$0xff] }
  0x28   : > { %1653 = vmatprep.subr.bf16.mxu0 %v1834_v5 }
  0x2b   : > { %1654 = vmatpush3.bf16.msra.mxu0 %v665_v14 }
  0x2c   : > { %1655 = vmatprep.subr.bf16.mxu0 %v1834_v5 }
  0x2f   : > { %1656 = vmatpush3.bf16.msra.mxu0 %v664_v17  ;;  %v864_v17 = vadd.f32 1e-05, %v863_v16 }
  0x30   : > { %1657 = vmatprep.subr.bf16.mxu0 %v1834_v5 }
  0x33   : > { %1658 = vmatpush3.bf16.msra.mxu0 %v663_v20 }
  0x34   : > { %1659 = vmatprep.subr.bf16.mxu0 %v1834_v5 }
  0x37   : > { %1660 = vmatpush3.bf16.msra.mxu0 %v662_v23 }
  0x38   : > { %1661 = vmatprep.subr.bf16.mxu0 %v1834_v5 }
  0x3b   : > { %1662 = vmatpush3.bf16.msra.mxu0 %v661_v26 }
  0x3e   : > { %1664 = vmatmul.mubr.bf16.vlgmr.msra.gmra.mxu0 %v660_v29  ;;  %v1543_v29 = vld [vmem:[%s623_s14] ss:$0 sm:$0xff] }
  0xfe   : > { %v703_v31 = vpop.f32.mrf.mxu0 }
  0xff   : > { %v718_v32 = vmul.f32 %v1539_v30, %v703_v31 }
 0x100   : > { %v1665_v33 = vpop.f32.mrf.mxu0 }
 0x101   : > { %720 = vadd.xlane.f32.xlu0 %v718_v32  ;;  %v1544_v33 = vld [vmem:[%s626_s29] ss:$0 sm:$0xff] }
 0x102   : > { %v706_v34 = vpop.f32.mrf.mxu0 }
 0x103   : > { %v719_v35 = vmul.f32 %v1539_v30, %v706_v34  ;;  %v710_v36 = vpack.c.bf16 %v706_v34, %v703_v31 }
 0x104   : > { %v1666_v37 = vpop.f32.mrf.mxu0 }
 0x105   : > { %722 = vadd.xlane.f32.xlu0 %v719_v35  ;;  %1668 = vmatpush3.bf16.xpose.msra.mxu1 %v710_v36 }
 0x106   : > { %1673 = vmatprep.subr.bf16.mxu1 %v1834_v5 }
 0x10c   : > { %1670 = vmatmul.mubr.bf16.vlgmr.msra.gmra.mxu1 %v725_v39 }
 0x10d   : > { %1674 = vmatpush3.bf16.msra.mxu1 %v710_v36  ;;  %1675 = vmatprep.mubr.msk.bf16.mxu1 %vm1835_vm0, %v1834_v5 }
 0x18a   : > { %v721_v42 = vpop.xlane.xlu0 %720 }
 0x18e   : > { %v723_v48 = vpop.xlane.xlu0 %722 }
 0x1cc   : > { %v760_v45 = vpop.f32.mrf.mxu1 }
 0x1cd   : > { %v769_v47 = vrot.slane %v760_v45, %v2017_v43 }
 0x1ce   : > { %v1671_v49 = vpop.f32.mrf.mxu1 }
 0x1cf   : > { %v770_v50 = vadd.f32 %v769_v47, %v721_v42  ;;  %v771_v51 = vadd.f32 %v769_v47, %v723_v48 }
 0x1d0   : > { %v763_v53 = vpop.f32.mrf.mxu1 }
 0x1d1   : > { %vm772_vm2 = vcmp.gt.f32.partialorder %v770_v50, 0.0  ;;  %v774_v54 = vmul.f32 0.2, %v770_v50  ;;  %vm773_vm3 = vcmp.gt.f32.partialorder %v771_v51, 0.0  ;;  %v775_v55 = vmul.f32 0.2, %v771_v51 }
 0x1d2   : > { %v1672_v56 = vpop.f32.mrf.mxu1 }
 0x1d3   : > { %v776_v57 = vsel %vm772_vm2, %v770_v50, %v774_v54  ;;  %v777_v58 = vsel %vm773_vm3, %v771_v51, %v775_v55 }
 0x1d4   : > { %v784_v59 = vsel %vm782_vm1, %v776_v57, -1e+30  ;;  %v785_v61 = vsel %vm783_vm5, %v777_v58, -1e+30 }
 0x1d5   : > { %v787_v60 = vsel %vm786_vm4, %v784_v59, -inf  ;;  %v790_v62 = vsel %vm786_vm4, %v785_v61, -inf }
 0x1d6   : > { %788 = vmax.xlane.f32.xlu1 %v787_v60 }
 0x1da   : > { %791 = vmax.xlane.f32.xlu1 %v790_v62 }
 0x25f   : > { %v789_v63 = vpop.xlane.xlu1 %788 }
 0x260   : > { %v793_v0 = vsub.f32 %v784_v59, %v789_v63 }
 0x262   : > { %v795_v1 = vmul.f32 1.442695, %v793_v0 }
 0x263   : > { %v792_v2 = vpop.xlane.xlu1 %791 }
 0x264   : > { %1783 = vpow2.f32 %v795_v1  ;;  %v794_v3 = vsub.f32 %v785_v61, %v792_v2 }
 0x266   : > { %v797_v4 = vmul.f32 1.442695, %v794_v3 }
 0x268   : > { %1785 = vpow2.f32 %v797_v4 }
 0x271   : > { %v1784_v5 = vpop.eup %1783 }
 0x272   : > { %v799_v6 = vsel %vm786_vm4, %v1784_v5, 0.0 }
 0x273   : > { %800 = vadd.xlane.f32.xlu0 %v799_v6 }
 0x275   : > { %v1786_v7 = vpop.eup %1785 }
 0x276   : > { %v802_v8 = vsel %vm786_vm4, %v1786_v7, 0.0 }
 0x277   : > { %803 = vadd.xlane.f32.xlu1 %v802_v8 }
 0x2fc   : > { %v801_v9 = vpop.xlane.xlu0 %800 }
 0x2fd   : > { %1787 = vrcp.f32 %v801_v9 }
 0x300   : > { %v804_v10 = vpop.xlane.xlu1 %803 }
 0x301   : > { %1789 = vrcp.f32 %v804_v10 }
 0x302   : > { %1791 = vrsqrt.f32 %v864_v17 }
 0x30a   : > { %v1788_v11 = vpop.eup %1787 }
 0x30b   : > { %v807_v13 = vmul.f32 %v1788_v11, %v1784_v5 }
 0x30e   : > { %v1790_v12 = vpop.eup %1789 }
 0x30f   : > { %v808_v14 = vmul.f32 %v1790_v12, %v1786_v7  ;;  %v1792_v19 = vpop.eup %1791 }
 0x310   : > { %v879_v24 = vrot.slane %v1792_v19, %v2017_v43 }
 0x311   : > { %v809_v15 = vpack.c.bf16 %v808_v14, %v807_v13 }
 0x313   : > { %1676 = vmatmul.mubr.msk.bf16.vlgmr.msra.gmra.mxu1 %vm786_vm4, %v809_v15 }
 0x3d3   : > { %v854_v20 = vpop.f32.mrf.mxu1 }
 0x3d4   : > { %v855_v21 = vadd.f32 %v1540_v18, %v854_v20 }
 0x3d5   : > { %v1677_v23 = vpop.f32.mrf.mxu1 }
 0x3d6   : > { %v861_v25 = vmax.f32 %v855_v21, 0.0 }
 0x3d7   : > { %v857_v26 = vpop.f32.mrf.mxu1 }
 0x3d8   : > { %v873_v27 = vsub.f32 %v861_v25, %v1542_v22  ;;  %v858_v28 = vadd.f32 %v1540_v18, %v857_v26 }
 0x3d9   : > { %v1678_v30 = vpop.f32.mrf.mxu1 }
 0x3da   : > { %v881_v31 = vmul.f32 %v879_v24, %v873_v27  ;;  %v862_v32 = vmax.f32 %v858_v28, 0.0 }
 0x3dc   : > { %v890_v34 = vmul.f32 %v1543_v29, %v881_v31  ;;  %v874_v35 = vsub.f32 %v862_v32, %v1542_v22 }
 0x3de   : > { %v899_v36 = vadd.f32 %v1544_v33, %v890_v34  ;;  %v882_v37 = vmul.f32 %v879_v24, %v874_v35 }
 0x3e0   : > { %901 = vst [vmem:[#allocation2] sm:$0xff] %v899_v36  ;;  %v891_v38 = vmul.f32 %v1543_v29, %v882_v37  ;;  %906 = sbr.rel (%p1545_p5) target bundleno = 1914 (0x77a), region = 96 }
 0x3e2   : > { %v900_v39 = vadd.f32 %v1544_v33, %v891_v38 }
 0x3e4   : > { %902 = vst [vmem:[#allocation2 + $0x8] sm:$0xff] %v900_v39 }
 0x3e5   : > { %v909_v42 = vld [vmem:[%s2350_s10] sm:$0x3]  ;;  %v1836_v44 = vmov 0.0   ;;  %vm1837_vm6 = vmmov 0   ;;  %v923_v46 = vsub.s32 1, %v2014_v41  ;;  %v1838_v48 = vmov 0  }
 0x3e6   : > { %1679 = vmatprep.subr.mxu1 %v1836_v44  ;;  %1683 = vmatprep.mubr.msk.f32.mxu1 %vm1837_vm6, %v1836_v44  ;;  %v913_v47 = vrot.slane %v909_v42, %v2017_v43  ;;  %v1152_v49 = vld [vmem:[%s2353_s13 + $0xf8] sm:$0xff]  ;;  %v1042_v41 = vld [vmem:[%s2351_s11] sm:$0x3]  ;;  %v1151_v51 = vld [vmem:[%s2353_s13 + $0xf0] sm:$0xff]  ;;  %vm1118_vm11 = vcmask 1041409   ;;  %vm1409_vm12 = vcmask 25600  }
 0x3e7   : > { %v2061_v45 = vld [vmem:[#allocation2] sm:$0xff]  ;;  %1793 = vset.pattern.permute.xlu0 %v1838_v48  ;;  %v924_v50 = vrot.slane %v909_v42, %v923_v46  ;;  %1578 = vmatprep.subr.mxu0 %v1152_v49  ;;  %v1136_v43 = vld [vmem:[%s2353_s13 + $0x78] sm:$0xff]  ;;  %v1135_v52 = vld [vmem:[%s2353_s13 + $0x70] sm:$0xff] }
 0x3e8   : > { %915 = vbcast.lane.b32.xlu0 %v913_v47, 256  ;;  %v1035_v53 = vld [vmem:[%s2352_s12] sm:$0x3]  ;;  %1579 = vmatpush3.msra.mxu0 %v1136_v43  ;;  %v1150_v54 = vld [vmem:[%s2353_s13 + $0xe8] sm:$0xff]  ;;  %v1168_v56 = vld [vmem:[%s2353_s13 + $0x178] sm:$0xff] }
 0x3e9   : > { %926 = vbcast.lane.b32.xlu1 %v924_v50, 256  ;;  %1580 = vmatprep.subr.mxu0 %v1151_v51  ;;  %v1134_v55 = vld [vmem:[%s2353_s13 + $0x68] sm:$0xff]  ;;  %v1149_v57 = vld [vmem:[%s2353_s13 + $0xe0] sm:$0xff]  ;;  %v1167_v59 = vld [vmem:[%s2353_s13 + $0x170] sm:$0xff] }
 0x3ea   : > { %1581 = vmatpush3.msra.mxu0 %v1135_v52  ;;  %v1133_v58 = vld [vmem:[%s2353_s13 + $0x60] sm:$0xff]  ;;  %v1148_v60 = vld [vmem:[%s2353_s13 + $0xd8] sm:$0xff]  ;;  %v1166_v62 = vld [vmem:[%s2353_s13 + $0x168] sm:$0xff] }
 0x3eb   : > { %v2055_v40 = vld [vmem:[#allocation2 + $0x8] sm:$0xff]  ;;  %1582 = vmatprep.subr.mxu0 %v1150_v54  ;;  %v1132_v61 = vld [vmem:[%s2353_s13 + $0x58] sm:$0xff]  ;;  %v1147_v63 = vld [vmem:[%s2353_s13 + $0xd0] sm:$0xff] }
 0x3ec   : > { %1680 = vmatpush3.msra.mxu1 %v2055_v40  ;;  %919 = vbcast.lane.b32.xlu0 %v913_v47, 264  ;;  %v1131_v0 = vld [vmem:[%s2353_s13 + $0x50] sm:$0xff]  ;;  %v1165_v1 = vld [vmem:[%s2353_s13 + $0x160] sm:$0xff]  ;;  %v1146_v2 = vld [vmem:[%s2353_s13 + $0xc8] sm:$0xff] }
 0x3ed   : > { %1681 = vmatprep.subr.mxu1 %v1836_v44  ;;  %930 = vbcast.lane.b32.xlu1 %v924_v50, 264  ;;  %v1130_v3 = vld [vmem:[%s2353_s13 + $0x48] sm:$0xff]  ;;  %v1164_v4 = vld [vmem:[%s2353_s13 + $0x158] sm:$0xff]  ;;  %v1145_v5 = vld [vmem:[%s2353_s13 + $0xc0] sm:$0xff] }
 0x3ee   : > { %1682 = vmatpush3.msra.mxu1 %v2061_v45  ;;  %1583 = vmatpush3.msra.mxu0 %v1134_v55  ;;  %v1129_v6 = vld [vmem:[%s2353_s13 + $0x40] sm:$0xff]  ;;  %v1163_v7 = vld [vmem:[%s2353_s13 + $0x150] sm:$0xff]  ;;  %v1144_v8 = vld [vmem:[%s2353_s13 + $0xb8] sm:$0xff] }
 0x3ef   : > { %1684 = vmatmul.mubr.msk.f32.vlgmr.msra.gmra.mxu1 %vm786_vm4, %v909_v42  ;;  %1686 = vmatprep.subr.mxu1 %v1836_v44  ;;  %v1128_v9 = vld [vmem:[%s2353_s13 + $0x38] sm:$0xff]  ;;  %v1162_v10 = vld [vmem:[%s2353_s13 + $0x148] sm:$0xff]  ;;  %v1143_v11 = vld [vmem:[%s2353_s13 + $0xb0] sm:$0xff] }
 0x3f0   : > { %1687 = vmatpush3.msra.mxu1 %v2055_v40  ;;  %1690 = vmatprep.mubr.msk.f32.mxu1 %vm1837_vm6, %v1836_v44  ;;  %v1127_v12 = vld [vmem:[%s2353_s13 + $0x30] sm:$0xff]  ;;  %v1161_v13 = vld [vmem:[%s2353_s13 + $0x140] sm:$0xff]  ;;  %v1142_v14 = vld [vmem:[%s2353_s13 + $0xa8] sm:$0xff] }
 0x3f1   : > { %1688 = vmatprep.subr.mxu1 %v1836_v44  ;;  %1038 = vperm.xlu0 %1793, %v1035_v53   ;;  %v1126_v15 = vld [vmem:[%s2353_s13 + $0x28] sm:$0xff]  ;;  %v1160_v16 = vld [vmem:[%s2353_s13 + $0x138] sm:$0xff]  ;;  %v1141_v17 = vld [vmem:[%s2353_s13 + $0xa0] sm:$0xff] }
 0x3f2   : > { %1689 = vmatpush3.msra.mxu1 %v2061_v45  ;;  %1584 = vmatprep.subr.mxu0 %v1149_v57  ;;  %v1125_v18 = vld [vmem:[%s2353_s13 + $0x20] sm:$0xff]  ;;  %v1159_v19 = vld [vmem:[%s2353_s13 + $0x130] sm:$0xff]  ;;  %v1140_v20 = vld [vmem:[%s2353_s13 + $0x98] sm:$0xff] }
 0x3f3   : > { %1691 = vmatmul.mubr.msk.f32.vlgmr.msra.gmra.mxu1 %vm786_vm4, %v1042_v41  ;;  %1693 = vmatprep.subr.mxu1 %v1836_v44  ;;  %v1124_v21 = vld [vmem:[%s2353_s13 + $0x18] sm:$0xff]  ;;  %v1158_v22 = vld [vmem:[%s2353_s13 + $0x128] sm:$0xff]  ;;  %v1139_v23 = vld [vmem:[%s2353_s13 + $0x90] sm:$0xff] }
 0x3f4   : > { %1694 = vmatpush3.msra.mxu1 %v1168_v56  ;;  %1585 = vmatpush3.msra.mxu0 %v1133_v58  ;;  %v1123_v24 = vld [vmem:[%s2353_s13 + $0x10] sm:$0xff]  ;;  %v1157_v25 = vld [vmem:[%s2353_s13 + $0x120] sm:$0xff]  ;;  %v1138_v26 = vld [vmem:[%s2353_s13 + $0x88] sm:$0xff] }
 0x3f5   : > { %1695 = vmatprep.subr.mxu1 %v1836_v44  ;;  %1586 = vmatprep.subr.mxu0 %v1148_v60  ;;  %v1122_v27 = vld [vmem:[%s2353_s13 + $0x8] sm:$0xff]  ;;  %v1156_v28 = vld [vmem:[%s2353_s13 + $0x118] sm:$0xff]  ;;  %v1137_v29 = vld [vmem:[%s2353_s13 + $0x80] sm:$0xff] }
 0x3f6   : > { %1696 = vmatpush3.msra.mxu1 %v1167_v59  ;;  %1587 = vmatpush3.msra.mxu0 %v1132_v61  ;;  %v1121_v30 = vld [vmem:[%s2353_s13] sm:$0xff]  ;;  %v1155_v31 = vld [vmem:[%s2353_s13 + $0x110] sm:$0xff]  ;;  %v1154_v32 = vld [vmem:[%s2353_s13 + $0x108] sm:$0xff] }
 0x3f7   : > { %1697 = vmatprep.subr.mxu1 %v1836_v44  ;;  %1588 = vmatprep.subr.mxu0 %v1147_v63  ;;  %v1153_v33 = vld [vmem:[%s2353_s13 + $0x100] sm:$0xff] }
 0x3f8   : > { %1698 = vmatpush3.msra.mxu1 %v1166_v62  ;;  %1589 = vmatpush3.msra.mxu0 %v1131_v0  ;;  %v1330_v0 = vld [vmem:[%s2373_s1 + $0x70] sm:$0xff] }
 0x3f9   : > { %1699 = vmatprep.subr.mxu1 %v1836_v44  ;;  %1590 = vmatprep.subr.mxu0 %v1146_v2  ;;  %v1329_v2 = vld [vmem:[%s2373_s1 + $0x68] sm:$0xff] }
 0x3fa   : > { %1700 = vmatpush3.msra.mxu1 %v1165_v1  ;;  %1591 = vmatpush3.msra.mxu0 %v1130_v3  ;;  %v1328_v3 = vld [vmem:[%s2373_s1 + $0x60] sm:$0xff] }
 0x3fb   : > { %1701 = vmatprep.subr.mxu1 %v1836_v44  ;;  %1592 = vmatprep.subr.mxu0 %v1145_v5  ;;  %v1326_v5 = vld [vmem:[%s2373_s1 + $0x50] sm:$0xff] }
 0x3fc   : > { %1702 = vmatpush3.msra.mxu1 %v1164_v4  ;;  %1593 = vmatpush3.msra.mxu0 %v1129_v6  ;;  %v1327_v4 = vld [vmem:[%s2373_s1 + $0x58] sm:$0xff]  ;;  %v1325_v6 = vld [vmem:[%s2373_s1 + $0x48] sm:$0xff] }
 0x3fd   : > { %1703 = vmatprep.subr.mxu1 %v1836_v44  ;;  %1594 = vmatprep.subr.mxu0 %v1144_v8  ;;  %v1323_v8 = vld [vmem:[%s2373_s1 + $0x38] sm:$0xff] }
 0x3fe   : > { %1704 = vmatpush3.msra.mxu1 %v1163_v7  ;;  %1595 = vmatpush3.msra.mxu0 %v1128_v9  ;;  %v1324_v7 = vld [vmem:[%s2373_s1 + $0x40] sm:$0xff]  ;;  %v1322_v9 = vld [vmem:[%s2373_s1 + $0x30] sm:$0xff] }
 0x3ff   : > { %1705 = vmatprep.subr.mxu1 %v1836_v44  ;;  %1596 = vmatprep.subr.mxu0 %v1143_v11  ;;  %v1320_v11 = vld [vmem:[%s2373_s1 + $0x20] sm:$0xff] }
 0x400   : > { %1706 = vmatpush3.msra.mxu1 %v1162_v10  ;;  %1597 = vmatpush3.msra.mxu0 %v1127_v12  ;;  %v1321_v10 = vld [vmem:[%s2373_s1 + $0x28] sm:$0xff]  ;;  %v1319_v12 = vld [vmem:[%s2373_s1 + $0x18] sm:$0xff] }
 0x401   : > { %1707 = vmatprep.subr.mxu1 %v1836_v44  ;;  %1598 = vmatprep.subr.mxu0 %v1142_v14  ;;  %v1317_v14 = vld [vmem:[%s2373_s1 + $0x8] sm:$0xff] }
 0x402   : > { %1708 = vmatpush3.msra.mxu1 %v1161_v13  ;;  %1599 = vmatpush3.msra.mxu0 %v1126_v15  ;;  %v1318_v13 = vld [vmem:[%s2373_s1 + $0x10] sm:$0xff]  ;;  %v1316_v15 = vld [vmem:[%s2373_s1] sm:$0xff] }
 0x403   : > { %1709 = vmatprep.subr.mxu1 %v1836_v44  ;;  %1600 = vmatprep.subr.mxu0 %v1141_v17 }
 0x404   : > { %1710 = vmatpush3.msra.mxu1 %v1160_v16  ;;  %1601 = vmatpush3.msra.mxu0 %v1125_v18 }
 0x405   : > { %1711 = vmatprep.subr.mxu1 %v1836_v44  ;;  %1602 = vmatprep.subr.mxu0 %v1140_v20 }
 0x406   : > { %1712 = vmatpush3.msra.mxu1 %v1159_v19  ;;  %1603 = vmatpush3.msra.mxu0 %v1124_v21  ;;  %v1548_v19 = vld [vmem:[%s2374_s2] ss:$0 sm:$0xff] }
 0x407   : > { %1713 = vmatprep.subr.mxu1 %v1836_v44  ;;  %1604 = vmatprep.subr.mxu0 %v1139_v23 }
 0x408   : > { %1714 = vmatpush3.msra.mxu1 %v1158_v22  ;;  %1605 = vmatpush3.msra.mxu0 %v1123_v24 }
 0x409   : > { %1715 = vmatprep.subr.mxu1 %v1836_v44  ;;  %1606 = vmatprep.subr.mxu0 %v1138_v26 }
 0x40a   : > { %1716 = vmatpush3.msra.mxu1 %v1157_v25  ;;  %1725 = vmatprep.mubr.msk.f32.mxu1 %vm1837_vm6, %v1836_v44 }
 0x40b   : > { %1717 = vmatprep.subr.mxu1 %v1836_v44  ;;  %1607 = vmatpush3.msra.mxu0 %v1122_v27 }
 0x40c   : > { %1718 = vmatpush3.msra.mxu1 %v1156_v28  ;;  %1608 = vmatprep.subr.mxu0 %v1137_v29 }
 0x40d   : > { %1719 = vmatprep.subr.mxu1 %v1836_v44  ;;  %1609 = vmatpush3.msra.mxu0 %v1121_v30 }
 0x40e   : > { %1720 = vmatpush3.msra.mxu1 %v1155_v31  ;;  %1728 = vmatprep.subr.mxu0 %v1836_v44 }
 0x40f   : > { %1721 = vmatprep.subr.mxu1 %v1836_v44 }
 0x410   : > { %1722 = vmatpush3.msra.mxu1 %v1154_v32 }
 0x411   : > { %1723 = vmatprep.subr.mxu1 %v1836_v44 }
 0x412   : > { %1724 = vmatpush3.msra.mxu1 %v1153_v33 }
 0x45a   : > { %v916_v35 = vpop.permute.xlu0 %915 }
 0x45b   : > { %v927_v34 = vpop.permute.xlu1 %926  ;;  %vm932_vm7 = vcmp.gt.f32.partialorder %v916_v35, 0.0 }
 0x45c   : > { %vm934_vm8 = vcmp.gt.f32.partialorder %v927_v34, 0.0  ;;  %v944_v38 = vsel %vm932_vm7, %v2061_v45, -1e+30 }
 0x45d   : > { %v946_v39 = vsel %vm934_vm8, %v2061_v45, -1e+30 }
 0x45e   : > { %v920_v37 = vpop.permute.xlu0 %919 }
 0x45f   : > { %v931_v36 = vpop.permute.xlu1 %930  ;;  %vm933_vm10 = vcmp.gt.f32.partialorder %v920_v37, 0.0 }
 0x460   : > { %vm935_vm9 = vcmp.gt.f32.partialorder %v931_v36, 0.0  ;;  %v945_v46 = vsel %vm933_vm10, %v2055_v40, -1e+30 }
 0x461   : > { %v947_v42 = vsel %vm935_vm9, %v2055_v40, -1e+30  ;;  %v948_v48 = vmax.f32 %v944_v38, %v945_v46  ;;  %v1331_v40 = vld [vmem:[%s2373_s1 + $0x78] sm:$0xff] }
 0x462   : > { %v955_v47 = vmax.f32 %v946_v39, %v947_v42 }
 0x463   : > { %v949_v50 = vrot.slane %v948_v48, 4 }
 0x464   : > { %v956_v49 = vrot.slane %v955_v47, 4 }
 0x465   : > { %v950_v43 = vmax.f32 %v948_v48, %v949_v50 }
 0x466   : > { %v957_v41 = vmax.f32 %v955_v47, %v956_v49 }
 0x467   : > { %v951_v52 = vrot.slane %v950_v43, 2 }
 0x468   : > { %v958_v51 = vrot.slane %v957_v41, 2 }
 0x469   : > { %v952_v54 = vmax.f32 %v950_v43, %v951_v52 }
 0x46a   : > { %v959_v53 = vmax.f32 %v957_v41, %v958_v51 }
 0x46b   : > { %v953_v55 = vrot.slane %v952_v54, 1 }
 0x46c   : > { %v960_v56 = vrot.slane %v959_v53, 1  ;;  %v1039_v57 = vpop.permute.xlu0 %1038 }
 0x46d   : > { %v954_v58 = vmax.f32 %v952_v54, %v953_v55 }
 0x46e   : > { %v961_v59 = vmax.f32 %v959_v53, %v960_v56 }
 0x470   : > { %v1119_v62 = vsel %vm1118_vm11, %v961_v59, %v954_v58 }
 0x4af   : > { %v1031_v45 = vpop.f32.mrf.mxu1 }
 0x4b0   : > { %v1041_v60 = vmul.f32 %v1039_v57, %v1031_v45 }
 0x4b1   : > { %v1685_v61 = vpop.f32.mrf.mxu1 }
 0x4b2   : > { %1240 = vmatprep.mubr.f32.mxu0 %v1041_v60 }
 0x4b3   : > { %1241 = vmatmul.mubr.f32.vlgmr.msra.gmra.mxu0 %v1119_v62  ;;  %v1112_v63 = vpop.f32.mrf.mxu1 }
 0x4b4   : > { %1726 = vmatmul.mubr.f32.vlgmr.msra.gmra.mxu1 %v1112_v63  ;;  %1729 = vmatpush3.msra.mxu0 %v1331_v40 }
 0x4b5   : > { %v1692_v1 = vpop.f32.mrf.mxu1  ;;  %1730 = vmatprep.subr.mxu0 %v1836_v44  ;;  %1760 = vmatprep.mubr.msk.f32.mxu0 %vm1837_vm6, %v1836_v44 }
 0x4b6   : > { %1731 = vmatpush3.msra.mxu0 %v1330_v0 }
 0x4b7   : > { %1732 = vmatprep.subr.mxu0 %v1836_v44 }
 0x4b8   : > { %1733 = vmatpush3.msra.mxu0 %v1329_v2 }
 0x4b9   : > { %1734 = vmatprep.subr.mxu0 %v1836_v44 }
 0x4ba   : > { %1735 = vmatpush3.msra.mxu0 %v1328_v3 }
 0x4bb   : > { %1736 = vmatprep.subr.mxu0 %v1836_v44 }
 0x4bc   : > { %1737 = vmatpush3.msra.mxu0 %v1327_v4 }
 0x4bd   : > { %1738 = vmatprep.subr.mxu0 %v1836_v44 }
 0x4be   : > { %1739 = vmatpush3.msra.mxu0 %v1326_v5 }
 0x4bf   : > { %1740 = vmatprep.subr.mxu0 %v1836_v44 }
 0x4c0   : > { %1741 = vmatpush3.msra.mxu0 %v1325_v6 }
 0x4c1   : > { %1742 = vmatprep.subr.mxu0 %v1836_v44 }
 0x4c2   : > { %1743 = vmatpush3.msra.mxu0 %v1324_v7 }
 0x4c3   : > { %1744 = vmatprep.subr.mxu0 %v1836_v44 }
 0x4c4   : > { %1745 = vmatpush3.msra.mxu0 %v1323_v8 }
 0x4c5   : > { %1746 = vmatprep.subr.mxu0 %v1836_v44 }
 0x4c6   : > { %1747 = vmatpush3.msra.mxu0 %v1322_v9 }
 0x4c7   : > { %1748 = vmatprep.subr.mxu0 %v1836_v44 }
 0x4c8   : > { %1749 = vmatpush3.msra.mxu0 %v1321_v10 }
 0x4c9   : > { %1750 = vmatprep.subr.mxu0 %v1836_v44 }
 0x4ca   : > { %1751 = vmatpush3.msra.mxu0 %v1320_v11 }
 0x4cb   : > { %1752 = vmatprep.subr.mxu0 %v1836_v44 }
 0x4cc   : > { %1753 = vmatpush3.msra.mxu0 %v1319_v12 }
 0x4cd   : > { %1754 = vmatprep.subr.mxu0 %v1836_v44 }
 0x4ce   : > { %1755 = vmatpush3.msra.mxu0 %v1318_v13 }
 0x4cf   : > { %1756 = vmatprep.subr.mxu0 %v1836_v44 }
 0x4d0   : > { %1757 = vmatpush3.msra.mxu0 %v1317_v14 }
 0x4d1   : > { %1758 = vmatprep.subr.mxu0 %v1836_v44  ;;  %v1549_v44 = vld [vmem:[%s2375_s24] ss:$0 sm:$0xff] }
 0x4d2   : > { %1759 = vmatpush3.msra.mxu0 %v1316_v15 }
 0x573   : > { %v1610_v16 = vpop.f32.mrf.mxu0 }
 0x574   : > { %v1312_v17 = vpop.f32.mrf.mxu1 }
 0x575   : > { %v1611_v18 = vpop.f32.mrf.mxu0 }
 0x576   : > { %v1612_v20 = vadd.f32 %v1611_v18, %v1610_v16  ;;  %v1727_v21 = vpop.f32.mrf.mxu1 }
 0x578   : > { %v1243_v22 = vadd.f32 %v1612_v20, %v1548_v19 }
 0x57a   : > { %v1313_v23 = vadd.f32 %v1312_v17, %v1243_v22 }
 0x57c   : > { %1761 = vmatmul.mubr.f32.vlgmr.msra.gmra.mxu0 %v1313_v23 }
 0x63c   : > { %v1405_v24 = vpop.f32.mrf.mxu0 }
 0x63d   : > { %v1406_v25 = vadd.f32 %v1549_v44, %v1405_v24 }
 0x63e   : > { %v1762_v26 = vpop.f32.mrf.mxu0 }
 0x63f   : > { %v1410_v27 = vsel %vm1409_vm12, %v1406_v25, -inf }
 0x640   : > { %1411 = vmax.xlane.f32.xlu1 %v1410_v27 }
 0x6c9   : > { %v1412_v28 = vpop.xlane.xlu1 %1411 }
 0x6ca   : > { %v1413_v29 = vsub.f32 %v1406_v25, %v1412_v28 }
 0x6cc   : > { %v1414_v30 = vmul.f32 1.442695, %v1413_v29 }
 0x6ce   : > { %1794 = vpow2.f32 %v1414_v30 }
 0x6db   : > { %v1795_v31 = vpop.eup %1794 }
 0x6dc   : > { %v1416_v32 = vsel %vm1409_vm12, %v1795_v31, 0.0 }
 0x6dd   : > { %1417 = vadd.xlane.f32.xlu0 %v1416_v32 }
 0x766   : > { %v1418_v33 = vpop.xlane.xlu0 %1417 }
 0x767   : > { %1796 = vlog2.f32 %v1418_v33 }
 0x774   : > { %v1797_v34 = vpop.eup %1796 }
 0x775   : > { %v1420_v35 = vmul.f32 0.6931472, %v1797_v34 }
 0x777   : > { %v1421_v36 = vsub.f32 %v1413_v29, %v1420_v35 }
 0x779   : > { %1422 = vst.msk [vmem:[#allocation3] sm:$0x3] %vm1409_vm12, %v1421_v36 }
 0x77a PF: > { %p1767_p6 = scmp.eq.s32.totalorder %s1936_s25, 9  ;;  %s1839_s19 = smov [#allocation3]  }
 0x77b   : > { %s1430_s14 = sshll.u32 %s1839_s19, 4  ;;  %s1431_s14 = int_to_ptr.vmem [resolvable:$true] %s1430_s14 }
 0x77c   : > { %s1798_s27 = scalar_lea.vmem %s1431_s14, 32  ;;  %p1805_p10 = scmp.lt.s32.totalorder %s1431_s14, %s1431_s14 }
 0x77d   : > { %p1799_p7 = scmp.ne.s32.totalorder %s1431_s14, %s1798_s27  ;;  %p1806_p11 = scmp.lt.s32.totalorder %s1798_s27, %s1798_s27 }
 0x77f   : > { %p1800_p8 = pnand %p1799_p7, %p1767_p6  ;;  %p1807_p12 = por %p1806_p11, %p1805_p10 }
 0x781   : > { %p1801_p9 = pneg %p1800_p8 }
 0x783   : > { %p1808_p13 = pnand %p1807_p12, %p1801_p9 }
 0x785   : > { %1811 = shalt.err (!%p1808_p13)
}
 0x786   : > { %s2376_s28 = sld [smem:[#allocation13_spill]] }
 0x78c   : > { %1764 = dma.vmem_to_hbm [thread:$0]  (%p1767_p6), %s1431_s14, 32, %s2376_s28, [#allocation4]  }
 0x78d   : > { %1827 = dma.done.wait (%p1767_p6), [#allocation4], 32  }
 0x78e   : > { %1829 = vsyncadd (%p1767_p6), [#allocation4], 4294967264 }
 0x78f PF: > { %s2377_s21 = sld [smem:[#allocation6_spill]] }
 0x795   : > { %s28_s24 = sadd.s32 1, %s2377_s21  }
 0x796   : > { %p25_p0 = scmp.ge.s32.totalorder %s28_s24, 12  }
 0x798   :  { %27 = sbr.rel (!%p25_p0) target bundleno = 9 (0x9), region = 144 }
 0x79d   :  { %1443 = vsyncpa [#allocation4], 1 }
 0x79e   :  { %1445 = vsyncpa [#allocation4 + $0x1], 1 }

</bundles_post_ra>
